<compile_context>
chip_gen: v7x
topology: tpu7x:2x2x1
jax: 0.10.0
libtpu: 0.0.40
codegen_flags: <defaults>
</compile_context>

<pallas_src>
import functools
import math

import jax
import jax.numpy as jnp
from jax.experimental import pallas as pl
from jax.experimental.pallas import tpu as pltpu


def _round_up(x, m):
    return ((x + m - 1) // m) * m


def _vt_attn_head_kernel(x_ref, m_ref, qt_ref, wv_t_ref, wl_t_ref, b_ref,
                         out_ref, *, approx_recip):
    """One batch tile of the attention-classifier head.

    x_ref    : (TB, V, E)   encoder output (compute dtype, unpadded E)
    m_ref    : (TB, V, 1)   visit mask, f32 (1 = valid, 0 = padding)
    qt_ref   : (E, P)       ((collector @ Wk) / sqrt(E))^T, pre-folded
    wv_t_ref : (E, E)       values weight, pre-transposed to (in, out)
    wl_t_ref : (P, E, Tp)   final linear weight, per-pool (in, out), T zero-padded
    b_ref    : (1, Tp)      final bias, zero-padded (f32)
    out_ref  : (TB, Tp)     lane-dense output slab
    """
    cdt = x_ref.dtype
    tb, v, e = x_ref.shape
    p_pools = qt_ref.shape[1]
    tp = out_ref.shape[1]

    x = x_ref[...]                                           # (TB, V, E)

    # scores: single flat 2-D MXU matmul (free leading-dim merge of x)
    x2d = x.reshape(tb * v, e)                               # (TB*V, E)
    s2d = jnp.dot(x2d, qt_ref[...],
                  preferred_element_type=jnp.float32)        # (TB*V, P)
    scores = s2d.reshape(tb, v, p_pools)                     # (TB, V, P), V on sublanes

    # masked_fill(mask == 0, -1e9) -- exact torch semantics (incl. all-masked rows)
    scores = jnp.where(m_ref[...] == 0.0, jnp.float32(-1.0e9), scores)

    # softmax over visits (sublane axis, V = one sublane group)
    smax = jnp.max(scores, axis=1, keepdims=True)            # (TB, 1, P)
    e_s = jnp.exp(scores - smax)
    denom = jnp.sum(e_s, axis=1, keepdims=True)              # (TB, 1, P)
    if approx_recip:
        probs = e_s * pl.reciprocal(denom, approx=True)      # EUP slot
    else:
        probs = e_s / denom                                  # exact (f32 check path)
    # self.dropout(p_attn) is identity at inference (train=False)

    acc = jnp.zeros((tb, tp), jnp.float32)
    for p in range(p_pools):                                 # static; P = 1 typically
        # value path reordered: pool x first (VPU mul + sublane reduce over V),
        # then apply Wv once per pool on (TB, E) rows.
        ctx = jnp.sum(probs[:, :, p:p + 1] * x, axis=1)      # (TB, E) f32
        pooled = jnp.dot(ctx.astype(cdt), wv_t_ref[...],
                         preferred_element_type=jnp.float32)  # (TB, E)
        h = jnp.maximum(pooled, 0.0).astype(cdt)             # ReLU
        acc = acc + jnp.dot(h, wl_t_ref[p],
                            preferred_element_type=jnp.float32)
    out_ref[...] = (acc + b_ref[...]).astype(out_ref.dtype)


def vt_classifier_forward(x, m, params, *, compute_dtype=jnp.bfloat16,
                          batch_tile=1024):
    """x: (B, V, E) bert output, m: (B, V) visit mask (1 valid / 0 pad)."""
    B, V, E = x.shape
    P = params['collector'].shape[0]
    T = params['w_lin'].shape[0]

    Tp = _round_up(T, 128)                  # lane-dense output (no masked vst)
    # Multiple of 16 keeps bf16 output blocks aligned to the packed (16,128) tile.
    TB = min(_round_up(batch_tile, 16), _round_up(B, 16))
    Bp = _round_up(B, TB)

    f32 = jnp.float32
    cdt = compute_dtype

    # Fold the key projection and 1/sqrt(E) into the collector queries; (E, P).
    q_t = ((params['collector'].astype(f32) @ params['w_keys'].astype(f32))
           * (1.0 / math.sqrt(E))).T.astype(cdt)

    wv_t = params['w_values'].astype(f32).T.astype(cdt)                # (E, E)

    wl = params['w_lin'].astype(f32).reshape(T, P, E)
    wl_t = jnp.pad(jnp.transpose(wl, (1, 2, 0)),
                   ((0, 0), (0, 0), (0, Tp - T))).astype(cdt)          # (P, E, Tp)

    bias = jnp.pad(params['b_lin'].astype(f32).reshape(1, T),
                   ((0, 0), (0, Tp - T)))                              # (1, Tp)

    # Cast to compute dtype first; pad only the batch dim, only if needed.
    xp = x.astype(cdt)                                                 # (B, V, E)
    mp = m.astype(f32).reshape(B, V, 1)                                # (B, V, 1)
    if Bp != B:
        xp = jnp.pad(xp, ((0, Bp - B), (0, 0), (0, 0)))
        mp = jnp.pad(mp, ((0, Bp - B), (0, 0), (0, 0)))
    # Padded rows are fully masked -> uniform softmax over zero x -> y = bias,
    # sliced away below; no NaN risk.

    out_dtype = f32 if jnp.dtype(cdt) == jnp.dtype(jnp.float32) else cdt
    kernel = functools.partial(
        _vt_attn_head_kernel,
        approx_recip=(jnp.dtype(cdt) != jnp.dtype(jnp.float32)))

    out = pl.pallas_call(
        kernel,
        out_shape=jax.ShapeDtypeStruct((Bp, Tp), out_dtype),
        grid=(Bp // TB,),
        in_specs=[
            pl.BlockSpec((TB, V, E), lambda i: (i, 0, 0)),   # batch-tiled x (unpadded E)
            pl.BlockSpec((TB, V, 1), lambda i: (i, 0, 0)),   # batch-tiled mask
            pl.BlockSpec((E, P), lambda i: (0, 0)),          # resident weights
            pl.BlockSpec((E, E), lambda i: (0, 0)),
            pl.BlockSpec((P, E, Tp), lambda i: (0, 0, 0)),
            pl.BlockSpec((1, Tp), lambda i: (0, 0)),
        ],
        out_specs=pl.BlockSpec((TB, Tp), lambda i: (i, 0)),
        compiler_params=pltpu.CompilerParams(
            dimension_semantics=("parallel",)),              # megacore split over batch
    )(xp, mp, q_t, wv_t, wl_t, bias)

    y = out[:B, :T].astype(f32)
    if T == 1:
        return y.reshape(-1)                                 # y_pred.flatten(0, -1)
    return y


def reference_forward(x, m, params):
    """Pure-JAX f32 reference replicating the torch math (eval mode)."""
    E = x.shape[-1]
    k = jnp.einsum('bve,fe->bvf', x, params['w_keys'])
    v = jnp.einsum('bve,fe->bvf', x, params['w_values'])
    scores = jnp.einsum('pe,bve->bpv', params['collector'], k) / math.sqrt(E)
    scores = jnp.where(m[:, None, :] == 0, -1.0e9, scores)
    p = jax.nn.softmax(scores, axis=-1)
    pooled = jnp.einsum('bpv,bve->bpe', p, v).reshape(x.shape[0], -1)
    y = jnp.maximum(pooled, 0.0) @ params['w_lin'].T + params['b_lin']
    return y.reshape(-1) if params['w_lin'].shape[0] == 1 else y


if __name__ == "__main__":
    B, V, E = 32, 8, 32     # batch, max_visits, embedding_dim
    P, T = 1, 1             # n_parallel_pools, n_targets

    key = jax.random.PRNGKey(0)
    kx, kc, kk, kv, kw, kb = jax.random.split(key, 6)

    # synthetic bert_model output + visit mask (deterministic)
    x = jax.random.normal(kx, (B, V, E), dtype=jnp.float32)
    lengths = 1 + (jnp.arange(B, dtype=jnp.int32) % V)
    m = (jnp.arange(V)[None, :] < lengths[:, None]).astype(jnp.float32)

    # deterministic parameters (shapes from VTClassifer.__init__)
    params = {
        'collector': jax.random.normal(kc, (P, E), dtype=jnp.float32),
        'w_keys':    jax.random.normal(kk, (E, E), dtype=jnp.float32) * 0.1,
        'w_values':  jax.random.normal(kv, (E, E), dtype=jnp.float32) * 0.1,
        'w_lin':     jax.random.normal(kw, (T, P * E), dtype=jnp.float32) * 0.1,
        'b_lin':     jax.random.normal(kb, (1, T), dtype=jnp.float32) * 0.1,
    }

    y_ref = reference_forward(x, m, params)

    # f32 compute path (tight check of the restructured math; 2 grid steps)
    y32 = vt_classifier_forward(x, m, params,
                                compute_dtype=jnp.float32, batch_tile=16)
    y32 = jax.block_until_ready(y32)
    assert y32.shape == (B,), y32.shape
    assert jnp.allclose(y32, y_ref, atol=5e-3, rtol=5e-3), (y32, y_ref)

    # bf16 MXU path (production configuration; bf16 lane-dense output slab)
    ybf = vt_classifier_forward(x, m, params,
                                compute_dtype=jnp.bfloat16, batch_tile=16)
    ybf = jax.block_until_ready(ybf)
    assert ybf.shape == (B,), ybf.shape
    assert jnp.allclose(ybf, y_ref, atol=5e-2, rtol=5e-2), (ybf, y_ref)

    print("KERNEL_OK")
</pallas_src>

<mosaic_0001>
module attributes {stable_mosaic.version = 11 : i64} {
  func.func @_vt_attn_head_kernel(%arg0: i32, %arg1: memref<16x8x32xf32, #tpu.memory_space<vmem>>, %arg2: memref<16x8x1xf32, #tpu.memory_space<vmem>>, %arg3: memref<32x1xf32, #tpu.memory_space<vmem>>, %arg4: memref<32x32xf32, #tpu.memory_space<vmem>>, %arg5: memref<1x32x128xf32, #tpu.memory_space<vmem>>, %arg6: memref<1x128xf32, #tpu.memory_space<vmem>>, %arg7: memref<16x128xf32, #tpu.memory_space<vmem>>) attributes {dimension_semantics = [#tpu.dimension_semantics<parallel>], iteration_bounds = array<i64: 2>, scalar_prefetch = 0 : i64, scratch_operands = 0 : i64, tpu.core_type = #tpu.core_type<tc>, window_params = [{transform_indices = @transform_0, window_bounds = array<i64: 16, 8, 32>}, {transform_indices = @transform_1, window_bounds = array<i64: 16, 8, 1>}, {pipeline_mode = #tpu.pipeline_mode<synchronous>, transform_indices = @transform_2, window_bounds = array<i64: 32, 1>}, {pipeline_mode = #tpu.pipeline_mode<synchronous>, transform_indices = @transform_3, window_bounds = array<i64: 32, 32>}, {pipeline_mode = #tpu.pipeline_mode<synchronous>, transform_indices = @transform_4, window_bounds = array<i64: 1, 32, 128>}, {pipeline_mode = #tpu.pipeline_mode<synchronous>, transform_indices = @transform_5, window_bounds = array<i64: 1, 128>}, {transform_indices = @transform_6, window_bounds = array<i64: 16, 128>}]} {
    %c0 = arith.constant 0 : index
    %c0_0 = arith.constant 0 : index
    %c0_1 = arith.constant 0 : index
    %0 = vector.load %arg1[%c0, %c0_0, %c0_1] : memref<16x8x32xf32, #tpu.memory_space<vmem>>, vector<16x8x32xf32>
    %1 = vector.shape_cast %0 : vector<16x8x32xf32> to vector<128x32xf32>
    %c0_2 = arith.constant 0 : index
    %c0_3 = arith.constant 0 : index
    %2 = vector.load %arg3[%c0_2, %c0_3] : memref<32x1xf32, #tpu.memory_space<vmem>>, vector<32x1xf32>
    %cst = arith.constant dense<0.000000e+00> : vector<128x1xf32>
    %3 = tpu.matmul %1, %2, %cst {dimension_numbers = #tpu.dot_dimension_numbers<[1], [0], [0], [1], [0, 0, 1, 1], [], []>} : vector<128x32xf32>, vector<32x1xf32>, vector<128x1xf32> -> vector<128x1xf32>
    %4 = vector.shape_cast %3 : vector<128x1xf32> to vector<16x8x1xf32>
    %c0_4 = arith.constant 0 : index
    %c0_5 = arith.constant 0 : index
    %c0_6 = arith.constant 0 : index
    %5 = vector.load %arg2[%c0_4, %c0_5, %c0_6] : memref<16x8x1xf32, #tpu.memory_space<vmem>>, vector<16x8x1xf32>
    %cst_7 = arith.constant 0.000000e+00 : f32
    %6 = vector.broadcast %cst_7 : f32 to vector<16x8x1xf32>
    %7 = arith.cmpf oeq, %5, %6 : vector<16x8x1xf32>
    %cst_8 = arith.constant -1.000000e+09 : f32
    %8 = vector.broadcast %cst_8 : f32 to vector<16x8x1xf32>
    %9 = arith.select %7, %8, %4 : vector<16x8x1xi1>, vector<16x8x1xf32>
    %cst_9 = arith.constant dense<0xFF800000> : vector<16x1xf32>
    %10 = vector.multi_reduction <maximumf>, %9, %cst_9 [1] : vector<16x8x1xf32> to vector<16x1xf32>
    %11 = vector.shape_cast %10 : vector<16x1xf32> to vector<16x1x1xf32>
    %12 = vector.broadcast %11 : vector<16x1x1xf32> to vector<16x8x1xf32>
    %13 = arith.subf %9, %12 : vector<16x8x1xf32>
    %14 = math.exp %13 : vector<16x8x1xf32>
    %cst_10 = arith.constant dense<0.000000e+00> : vector<16x1xf32>
    %15 = vector.multi_reduction <add>, %14, %cst_10 [1] : vector<16x8x1xf32> to vector<16x1xf32>
    %16 = vector.shape_cast %15 : vector<16x1xf32> to vector<16x1x1xf32>
    %17 = vector.broadcast %16 : vector<16x1x1xf32> to vector<16x8x1xf32>
    %18 = arith.divf %14, %17 : vector<16x8x1xf32>
    %cst_11 = arith.constant 0.000000e+00 : f32
    %19 = vector.broadcast %cst_11 : f32 to vector<16x128xf32>
    %20 = vector.broadcast %18 : vector<16x8x1xf32> to vector<16x8x32xf32>
    %21 = arith.mulf %20, %0 : vector<16x8x32xf32>
    %cst_12 = arith.constant dense<0.000000e+00> : vector<16x32xf32>
    %22 = vector.multi_reduction <add>, %21, %cst_12 [1] : vector<16x8x32xf32> to vector<16x32xf32>
    %c0_13 = arith.constant 0 : index
    %c0_14 = arith.constant 0 : index
    %23 = vector.load %arg4[%c0_13, %c0_14] : memref<32x32xf32, #tpu.memory_space<vmem>>, vector<32x32xf32>
    %cst_15 = arith.constant dense<0.000000e+00> : vector<16x32xf32>
    %24 = tpu.matmul %22, %23, %cst_15 {dimension_numbers = #tpu.dot_dimension_numbers<[1], [0], [0], [1], [0, 0, 1, 1], [], []>} : vector<16x32xf32>, vector<32x32xf32>, vector<16x32xf32> -> vector<16x32xf32>
    %cst_16 = arith.constant 0.000000e+00 : f32
    %25 = vector.broadcast %cst_16 : f32 to vector<16x32xf32>
    %26 = arith.maximumf %24, %25 : vector<16x32xf32>
    %c0_17 = arith.constant 0 : index
    %c0_18 = arith.constant 0 : index
    %c0_19 = arith.constant 0 : index
    %27 = vector.load %arg5[%c0_17, %c0_18, %c0_19] : memref<1x32x128xf32, #tpu.memory_space<vmem>>, vector<1x32x128xf32>
    %28 = vector.shape_cast %27 : vector<1x32x128xf32> to vector<32x128xf32>
    %cst_20 = arith.constant dense<0.000000e+00> : vector<16x128xf32>
    %29 = tpu.matmul %26, %28, %cst_20 {dimension_numbers = #tpu.dot_dimension_numbers<[1], [0], [0], [1], [0, 0, 1, 1], [], []>} : vector<16x32xf32>, vector<32x128xf32>, vector<16x128xf32> -> vector<16x128xf32>
    %30 = arith.addf %19, %29 : vector<16x128xf32>
    %c0_21 = arith.constant 0 : index
    %c0_22 = arith.constant 0 : index
    %31 = vector.load %arg6[%c0_21, %c0_22] : memref<1x128xf32, #tpu.memory_space<vmem>>, vector<1x128xf32>
    %32 = vector.broadcast %31 : vector<1x128xf32> to vector<16x128xf32>
    %33 = arith.addf %30, %32 : vector<16x128xf32>
    %c0_23 = arith.constant 0 : index
    %c0_24 = arith.constant 0 : index
    %34 = vector.load %arg7[%c0_23, %c0_24] : memref<16x128xf32, #tpu.memory_space<vmem>>, vector<16x128xf32>
    tpu.vector_store %arg7[%c0_23, %c0_24], %33 {strides = array<i32>} : memref<16x128xf32, #tpu.memory_space<vmem>>, vector<16x128xf32>,
    return
  }
  func.func @transform_0(%arg0: i32) -> (i32, i32, i32) {
    %c0_i32 = arith.constant 0 : i32
    %c0_i32_0 = arith.constant 0 : i32
    %c0_i32_1 = arith.constant 0 : i32
    return %arg0, %c0_i32, %c0_i32_0 : i32, i32, i32
  }
  func.func @transform_1(%arg0: i32) -> (i32, i32, i32) {
    %c0_i32 = arith.constant 0 : i32
    %c0_i32_0 = arith.constant 0 : i32
    %c0_i32_1 = arith.constant 0 : i32
    return %arg0, %c0_i32, %c0_i32_0 : i32, i32, i32
  }
  func.func @transform_2(%arg0: i32) -> (i32, i32) {
    %c0_i32 = arith.constant 0 : i32
    %c0_i32_0 = arith.constant 0 : i32
    %c0_i32_1 = arith.constant 0 : i32
    return %c0_i32, %c0_i32_0 : i32, i32
  }
  func.func @transform_3(%arg0: i32) -> (i32, i32) {
    %c0_i32 = arith.constant 0 : i32
    %c0_i32_0 = arith.constant 0 : i32
    %c0_i32_1 = arith.constant 0 : i32
    return %c0_i32, %c0_i32_0 : i32, i32
  }
  func.func @transform_4(%arg0: i32) -> (i32, i32, i32) {
    %c0_i32 = arith.constant 0 : i32
    %c0_i32_0 = arith.constant 0 : i32
    %c0_i32_1 = arith.constant 0 : i32
    %c0_i32_2 = arith.constant 0 : i32
    return %c0_i32, %c0_i32_0, %c0_i32_1 : i32, i32, i32
  }
  func.func @transform_5(%arg0: i32) -> (i32, i32) {
    %c0_i32 = arith.constant 0 : i32
    %c0_i32_0 = arith.constant 0 : i32
    %c0_i32_1 = arith.constant 0 : i32
    return %c0_i32, %c0_i32_0 : i32, i32
  }
  func.func @transform_6(%arg0: i32) -> (i32, i32) {
    %c0_i32 = arith.constant 0 : i32
    %c0_i32_0 = arith.constant 0 : i32
    return %arg0, %c0_i32 : i32, i32
  }
}

</mosaic_0001>

<bundles_post_ra>
// kernel: tpu_custom_call.1
= control target key start
LH: loop header
LB: loop body
LE: loop exit
PB: predicated region body
PF: predicated region fallthrough
CT: control target
= control target key end

     0   :  { %11 = vsyncpa [#allocation3], 0  ;;  %s2335_s0 = inlined_call_operand.vmem [shape: f32[32,8,32], index: 0, kind: input, shape index: {}]   ;;  %s2336_s1 = inlined_call_operand.vmem [shape: f32[32,8,1], index: 1, kind: input, shape index: {}]   ;;  %s2337_s2 = inlined_call_operand.vmem [shape: f32[32,1], index: 2, kind: input, shape index: {}]   ;;  %s2338_s3 = inlined_call_operand.vmem [shape: f32[32,32], index: 3, kind: input, shape index: {}]   ;;  %s2339_s4 = inlined_call_operand.hbm [shape: f32[1,32,128], index: 4, kind: input, shape index: {}]   ;;  %s2340_s5 = inlined_call_operand.vmem [shape: f32[1,128], index: 5, kind: input, shape index: {}]   ;;  %s2341_s6 = inlined_call_operand.hbm [shape: f32[32,128], index: 6, kind: output, shape index: {}]  }
   0x1   :  { %12 = vsyncpa [#allocation4], 0 }
   0x2   :  { %14 = vsyncpa [#allocation4 + $0x1], 0  ;;  %s1797_s21 = smov 0   ;;  %s1799_s22 = smov 0  }
   0x3   :  { %s1801_s23 = smov 0   ;;  %s1803_s24 = smov 0  }
   0x4 LB: > { %s1818_s25 = sadd.s32 4294967295, %s1753_s24   ;;  %s1381_s26 = sadd.s32 4294967294, %s1753_s24   ;;  %s1753_s24 = sphi %s1803_s24, %s2357_s24   ;;  %s1749_s23 = sphi %s1801_s23, %s2356_s23   ;;  %s1745_s22 = sphi %s1799_s22, %s2355_s22   ;;  %s1741_s21 = sphi %s1797_s21, %s2354_s21  }
   0x5   : > { %s1822_s27 = sadd.s32 1, %s1753_s24   ;;  %s163_s28 = sadd.s32 1, %s1749_s23 }
   0x6   : > { %s160_s29 = ssub.s32 %s1753_s24, %s1822_s27  ;;  %p173_p0 = scmp.ne.s32.totalorder %s1749_s23, %s1745_s22 }
   0x7   : > { %p161_p1 = scmp.eq.s32.totalorder %s160_s29, 0  ;;  %p174_p2 = scmp.eq.s32.totalorder %s1818_s25, 1 }
   0x8   : > { %p179_p3 = scmp.ne.s32.totalorder %s1745_s22, %s1741_s21  ;;  %p180_p4 = scmp.eq.s32.totalorder %s1381_s26, 1 }
   0x9   : > { %s1833_s30 = scalar_select %p161_p1, %s1749_s23, %s163_s28  }
   0xa   : > { %p1835_p5 = por %p174_p2, %p173_p0  ;;  %p1839_p6 = por %p180_p4, %p179_p3 }
   0xb   : > { %p1382_p7 = scmp.ge.s32.totalorder %s1753_s24, 1  ;;  %p187_p8 = scmp.lt.s32.totalorder %s1753_s24, 3 }
   0xc   : > { %s2345_s7 = scalar_select %p1835_p5, 1, 0 }
   0xd   : > { %s2346_s8 = scalar_select %p1839_p6, 1, 0 }
   0xe   : > { %p2342_p9 = scmp.eq.s32.totalorder %s1818_s25, 0  ;;  %p1846_p10 = pnand %p1382_p7, %p187_p8 }
   0xf   : > { %s1755_s10 = smov [#allocation2]   ;;  %s1659_s15 = scalar_lea.hbm %s2339_s4, 512 }
  0x10   : > { %s2347_s9 = scalar_select %p1846_p10, 1, 0 }
  0x11   : > { %s205_s11 = sshll.u32 %s1755_s10, 4  ;;  %p1539_p11 = pneg %p1846_p10  ;;  %s206_s11 = int_to_ptr.vmem [resolvable:$true] %s205_s11 }
  0x12   : > { %p1660_p13 = scmp.ne.s32.totalorder %s2339_s4, %s1659_s15  ;;  %p1666_p3 = scmp.lt.u32.totalorder %s1659_s15, %s2339_s4 }
  0x13   : > { %p1854_p12 = pnand %p2342_p9, %p1539_p11 }
  0x15   : > { %p1661_p0 = pneg %p1854_p12 }
  0x17   : > { %p1662_p1 = pnand %p1661_p0, %p1660_p13 }
  0x19   : > { %p1663_p2 = pneg %p1662_p1 }
  0x1b   : > { %p1668_p4 = pnand %p1666_p3, %p1663_p2 }
  0x1d   : > { %1671 = shalt.err (!%p1668_p4)
}
  0x1e   : > { %s1672_s20 = scalar_lea.vmem %s206_s11, 512  ;;  %p1680_p9 = scmp.lt.s32.totalorder %s206_s11, %s206_s11 }
  0x1f   : > { %p1673_p7 = scmp.ne.s32.totalorder %s206_s11, %s1672_s20  ;;  %p1681_p6 = scmp.lt.s32.totalorder %s1672_s20, %s1672_s20 }
  0x21   : > { %p1675_p8 = pnand %p1673_p7, %p1661_p0  ;;  %p1682_p5 = por %p1681_p6, %p1680_p9 }
  0x23   : > { %p1676_p11 = pneg %p1675_p8 }
  0x25   : > { %p1683_p10 = pnand %p1682_p5, %p1676_p11 }
  0x27   : > { %1686 = shalt.err (!%p1683_p10)
}
  0x28   : > { %s1756_s26 = smov 128   ;;  %s1757_s28 = smov 8  }
  0x29   : > { %1542 = dma.hbm_to_vmem [thread:$0]  (!%p1854_p12), %s2339_s4, 512, %s206_s11, [#allocation3], %s1756_s26, %s1756_s26, %s1757_s28  }
  0x2a   : > { %p2349_p13 = scmp.ne.s32.totalorder %s2347_s9, 0 }
  0x2b   : > { %p2350_p1 = scmp.eq.s32.totalorder (!%p2349_p13), %s1818_s25, 0 }
  0x2c   : > { %242 = sbr.rel (%p2349_p13) target bundleno = 971 (0x3cb), region = 44 }
  0x33   : > { %1732 = dma.done.wait (%p2350_p1), [#allocation3], 512   ;;  %p2351_p0 = pmov %p2350_p1 }
  0x34   : > { %s1388_s13 = sshll.u32 %s1818_s25, 4  ;;  %vm310_vm0 = vcmask 261120   ;;  %v306_v0 = vld [vmem:[%s2337_s2] sm:$0xff]  ;;  %v307_v1 = vld [vmem:[%s2337_s2 + $0x8] sm:$0xff]  ;;  %v308_v2 = vld [vmem:[%s2337_s2 + $0x10] sm:$0xff]  ;;  %v1758_v22 = vmov 0  }
  0x35   : > { %1734 = vsyncadd (%p2351_p0), [#allocation3], 4294966784  ;;  %p278_p5 = scmp.lt.s32.totalorder %s1388_s13, 31  ;;  %v1505_v3 = vpack.c.bf16 %v307_v1, %v306_v0  ;;  %v309_v4 = vld [vmem:[%s2337_s2 + $0x18] sm:$0xff]  ;;  %1588 = vset.pattern.permute.xlu0 %v1758_v22  ;;  %1589 = vset.pattern.permute.xlu1 %v1758_v22  ;;  %vm552_vm3 = vcmask 7168   ;;  %p2352_p9 = scmp.ne.s32.totalorder %s2345_s7, 0 }
  0x36   : > { %v1509_v7 = vpack.c.bf16 %v309_v4, %v308_v2 }
  0x37   : > { %s2359_s13 = smov (!%p278_p5, %s1388_s13), 31  ;;  %1506 = vmatprep.subr.bf16.mxu0 %v1505_v3  ;;  %1529 = vmatprep.subr.bf16.mxu1 %v1505_v3 }
  0x38   : > { %s1389_s12 = sshll.u32 %s2359_s13, 3  ;;  %1508 = vmatpush3.bf16.msra.mxu0 %v1505_v3  ;;  %1531 = vmatpush3.bf16.msra.mxu1 %v1505_v3 }
  0x39   : > { %s1889_s9 = scalar_lea.vmem %s2335_s0, %s1389_s12  ;;  %1510 = vmatprep.subr.bf16.mxu0 %v1509_v7  ;;  %1530 = vmatprep.subr.bf16.mxu1 %v1509_v7  ;;  %s1973_s14 = scalar_lea.vmem %s2336_s1, %s1389_s12 }
  0x3a   : > { %v1904_v5 = vld [vmem:[%s1889_s9] sm:$0xff]  ;;  %v1914_v8 = vld [vmem:[%s1889_s9 + $0x8] sm:$0xff]  ;;  %v1920_v10 = vld [vmem:[%s1889_s9 + $0x10] sm:$0xff] }
  0x3b   : > { %v1907_v6 = vld [vmem:[%s1889_s9 + $0x60] sm:$0xff]  ;;  %1459 = vmatprep.mubr.msk.f32.mxu0 %vm310_vm0, %v1904_v5  ;;  %v1917_v9 = vld [vmem:[%s1889_s9 + $0x68] sm:$0xff]  ;;  %v304_v11 = vld [vmem:[%s1889_s9 + $0x70] sm:$0xff] }
  0x3c   : > { %1477 = vmatprep.mubr.msk.f32.mxu1 %vm310_vm0, %v1907_v6  ;;  %1512 = vmatpush3.bf16.msra.mxu0 %v1509_v7  ;;  %v1931_v12 = vld [vmem:[%s1889_s9 + $0x18] sm:$0xff]  ;;  %v1935_v14 = vld [vmem:[%s1889_s9 + $0x20] sm:$0xff]  ;;  %v1943_v15 = vld [vmem:[%s1889_s9 + $0x28] sm:$0xff] }
  0x3d   : > { %1532 = vmatpush3.bf16.msra.mxu1 %v1509_v7  ;;  %v305_v13 = vld [vmem:[%s1889_s9 + $0x78] sm:$0xff]  ;;  %v1946_v16 = vld [vmem:[%s1889_s9 + $0x30] sm:$0xff]  ;;  %v1954_v18 = vld [vmem:[%s1889_s9 + $0x40] sm:$0xff] }
  0x3e   : > { %v297_v17 = vld [vmem:[%s1889_s9 + $0x38] sm:$0xff]  ;;  %v1960_v19 = vld [vmem:[%s1889_s9 + $0x48] sm:$0xff]  ;;  %v300_v20 = vld [vmem:[%s1889_s9 + $0x50] sm:$0xff] }
  0x3f   : > { %1460 = vmatmul.mubr.msk.f32.vlgmr.msra.gmra.mrb[0].mxu0 %vm310_vm0, %v1914_v8  ;;  %v301_v21 = vld [vmem:[%s1889_s9 + $0x58] sm:$0xff]  ;;  %v505_v23 = vld [vmem:[%s1973_s14 + $0x8] sm:$0xff]  ;;  %v504_v25 = vld [vmem:[%s1973_s14] sm:$0xff] }
  0x40   : > { %1478 = vmatmul.mubr.msk.f32.vlgmr.msra.gmra.mrb[0].mxu1 %vm310_vm0, %v1917_v9  ;;  %1462 = vmatprep.mubr.msk.f32.mxu0 %vm310_vm0, %v1920_v10  ;;  %v517_v24 = vld [vmem:[%s1973_s14 + $0x68] sm:$0xff]  ;;  %v516_v26 = vld [vmem:[%s1973_s14 + $0x60] sm:$0xff]  ;;  %v507_v27 = vld [vmem:[%s1973_s14 + $0x18] sm:$0xff]  ;;  %vm521_vm1 = vcmp.eq.f32.partialorder %v505_v23, 0.0  ;;  %vm520_vm4 = vcmp.eq.f32.partialorder %v504_v25, 0.0 }
  0x41   : > { %1480 = vmatprep.mubr.msk.f32.mxu1 %vm310_vm0, %v304_v11  ;;  %v519_v28 = vld [vmem:[%s1973_s14 + $0x78] sm:$0xff]  ;;  %v506_v29 = vld [vmem:[%s1973_s14 + $0x10] sm:$0xff]  ;;  %vm533_vm2 = vcmp.eq.f32.partialorder %v517_v24, 0.0  ;;  %vm532_vm5 = vcmp.eq.f32.partialorder %v516_v26, 0.0  ;;  %vm523_vm6 = vcmp.eq.f32.partialorder %v507_v27, 0.0  ;;  %v2000_v49 = vld [vmem:[%s1973_s14 + $0x28] sm:$0xff] }
  0x42   : > { %vm535_vm7 = vcmp.eq.f32.partialorder %v519_v28, 0.0  ;;  %vm522_vm8 = vcmp.eq.f32.partialorder %v506_v29, 0.0  ;;  %v518_v32 = vld [vmem:[%s1973_s14 + $0x70] sm:$0xff]  ;;  %v2013_v0 = vld [vmem:[%s1973_s14 + $0x20] sm:$0xff]  ;;  %vm525_vm10 = vcmp.eq.f32.partialorder %v2000_v49, 0.0 }
  0x43   : > { %1463 = vmatmul.mubr.msk.f32.gmra.mrb[2].mxu0 %vm310_vm0, %v1931_v12  ;;  %vm534_vm9 = vcmp.eq.f32.partialorder %v518_v32, 0.0  ;;  %vm524_vm11 = vcmp.eq.f32.partialorder %v2013_v0, 0.0  ;;  %v2034_v32 = vld [vmem:[%s1973_s14 + $0x48] sm:$0xff] }
  0x44   : > { %1481 = vmatmul.mubr.msk.f32.gmra.mrb[2].mxu1 %vm310_vm0, %v305_v13  ;;  %1465 = vmatprep.mubr.msk.f32.mxu0 %vm310_vm0, %v1935_v14  ;;  %vm529_vm14 = vcmp.eq.f32.partialorder %v2034_v32, 0.0 }
  0x47   : > { %1466 = vmatmul.mubr.msk.f32.gmra.mrb[4].mxu0 %vm310_vm0, %v1943_v15 }
  0x48   : > { %1468 = vmatprep.mubr.msk.f32.mxu0 %vm310_vm0, %v1946_v16 }
  0x4b   : > { %1469 = vmatmul.mubr.msk.f32.gmra.mrb[6].mxu0 %vm310_vm0, %v297_v17 }
  0x4c   : > { %1471 = vmatprep.mubr.msk.f32.mxu0 %vm310_vm0, %v1954_v18 }
  0x4f   : > { %1472 = vmatmul.mubr.msk.f32.gmra.mrb[8].mxu0 %vm310_vm0, %v1960_v19 }
  0x50   : > { %1474 = vmatprep.mubr.msk.f32.mxu0 %vm310_vm0, %v300_v20 }
  0x53   : > { %1475 = vmatmul.mubr.msk.f32.gmra.mrb[10].mxu0 %vm310_vm0, %v301_v21  ;;  %v2023_v21 = vld [vmem:[%s1973_s14 + $0x38] sm:$0xff] }
  0x54   : > { %vm527_vm12 = vcmp.eq.f32.partialorder %v2023_v21, 0.0 }
 0x112   : > { %v1461_v30 = vpop.f32.mrb[0].mxu0 }
 0x113   : > { %v1479_v31 = vpop.f32.mrb[0].mxu1  ;;  %v1983_v33 = vsel %vm521_vm1, -1e+09, %v1461_v30  ;;  %v425_v35 = vpop.f32.mrb[1].mxu0 }
 0x114   : > { %v1985_v34 = vsel %vm533_vm2, -1e+09, %v1479_v31  ;;  %v485_v36 = vpop.f32.mrb[1].mxu1  ;;  %v560_v37 = vsel %vm552_vm3, %v1983_v33, -inf  ;;  %v1991_v39 = vsel %vm520_vm4, -1e+09, %v425_v35 }
 0x115   : > { %v644_v38 = vsel %vm552_vm3, %v1985_v34, -inf  ;;  %v1993_v40 = vsel %vm532_vm5, -1e+09, %v485_v36  ;;  %v561_v41 = vrot.slane %v560_v37, 4  ;;  %v553_v43 = vsel %vm552_vm3, %v1991_v39, -inf  ;;  %v2031_v31 = vld [vmem:[%s1973_s14 + $0x30] sm:$0xff] }
 0x116   : > { %v645_v42 = vrot.slane %v644_v38, 4  ;;  %v637_v44 = vsel %vm552_vm3, %v1993_v40, -inf  ;;  %v554_v45 = vrot.slane %v553_v43, 4  ;;  %v1464_v47 = vpop.f32.mrb[2].mxu0  ;;  %vm526_vm13 = vcmp.eq.f32.partialorder %v2031_v31, 0.0 }
 0x117   : > { %v638_v46 = vrot.slane %v637_v44, 4  ;;  %v1482_v48 = vpop.f32.mrb[2].mxu1  ;;  %v562_v50 = vmax.f32 %v560_v37, %v561_v41  ;;  %v2003_v52 = vsel %vm523_vm6, -1e+09, %v1464_v47  ;;  %v435_v54 = vpop.f32.mrb[3].mxu0  ;;  %vm1087_vm4 = vcmask 1042434  }
 0x118   : > { %v646_v51 = vmax.f32 %v644_v38, %v645_v42  ;;  %v2006_v53 = vsel %vm535_vm7, -1e+09, %v1482_v48  ;;  %v495_v55 = vpop.f32.mrb[3].mxu1  ;;  %v555_v56 = vmax.f32 %v553_v43, %v554_v45  ;;  %v574_v58 = vsel %vm552_vm3, %v2003_v52, -inf }
 0x119   : > { %v639_v57 = vmax.f32 %v637_v44, %v638_v46  ;;  %v658_v59 = vsel %vm552_vm3, %v2006_v53, -inf  ;;  %v563_v60 = vrot.slane %v562_v50, 2  ;;  %v575_v62 = vrot.slane %v574_v58, 4 }
 0x11a   : > { %v647_v61 = vrot.slane %v646_v51, 2  ;;  %v659_v63 = vrot.slane %v658_v59, 4  ;;  %v556_v1 = vrot.slane %v555_v56, 2  ;;  %v2016_v3 = vsel %vm522_vm8, -1e+09, %v435_v54  ;;  %v1467_v20 = vpop.f32.mrb[4].mxu0 }
 0x11b   : > { %v640_v2 = vrot.slane %v639_v57, 2  ;;  %v2019_v4 = vsel %vm534_vm9, -1e+09, %v495_v55  ;;  %v564_v7 = vmax.f32 %v562_v50, %v563_v60  ;;  %v576_v13 = vmax.f32 %v574_v58, %v575_v62  ;;  %v445_v26 = vpop.f32.mrb[5].mxu0 }
 0x11c   : > { %v648_v11 = vmax.f32 %v646_v51, %v647_v61  ;;  %v660_v17 = vmax.f32 %v658_v59, %v659_v63  ;;  %v557_v22 = vmax.f32 %v555_v56, %v556_v1  ;;  %v567_v24 = vsel %vm552_vm3, %v2016_v3, -inf }
 0x11d   : > { %v641_v23 = vmax.f32 %v639_v57, %v640_v2  ;;  %v651_v25 = vsel %vm552_vm3, %v2019_v4, -inf  ;;  %v565_v27 = vrot.slane %v564_v7, 1  ;;  %v577_v29 = vrot.slane %v576_v13, 2 }
 0x11e   : > { %v649_v28 = vrot.slane %v648_v11, 1  ;;  %v661_v30 = vrot.slane %v660_v17, 2  ;;  %v558_v35 = vrot.slane %v557_v22, 1  ;;  %v568_v37 = vrot.slane %v567_v24, 4  ;;  %v1470_v41 = vpop.f32.mrb[6].mxu0 }
 0x11f   : > { %v642_v36 = vrot.slane %v641_v23, 1  ;;  %v652_v38 = vrot.slane %v651_v25, 4  ;;  %v566_v42 = vmax.f32 %v564_v7, %v565_v27  ;;  %v578_v44 = vmax.f32 %v576_v13, %v577_v29  ;;  %v455_v46 = vpop.f32.mrb[7].mxu0  ;;  %v512_v27 = vld [vmem:[%s1973_s14 + $0x40] sm:$0xff] }
 0x120   : > { %v650_v43 = vmax.f32 %v648_v11, %v649_v28  ;;  %v662_v45 = vmax.f32 %v660_v17, %v661_v30  ;;  %v559_v47 = vmax.f32 %v557_v22, %v558_v35  ;;  %v569_v50 = vmax.f32 %v567_v24, %v568_v37 }
 0x121   : > { %v643_v48 = vmax.f32 %v641_v23, %v642_v36  ;;  %v653_v51 = vmax.f32 %v651_v25, %v652_v38  ;;  %v666_v54 = vsub.f32 %v1983_v33, %v566_v42  ;;  %v579_v56 = vrot.slane %v578_v44, 1 }
 0x122   : > { %v678_v55 = vsub.f32 %v1985_v34, %v650_v43  ;;  %v663_v57 = vrot.slane %v662_v45, 1  ;;  %v665_v58 = vsub.f32 %v1991_v39, %v559_v47  ;;  %v570_v60 = vrot.slane %v569_v50, 2  ;;  %v1473_v62 = vpop.f32.mrb[8].mxu0 }
 0x123   : > { %v677_v59 = vsub.f32 %v1993_v40, %v643_v48  ;;  %v654_v61 = vrot.slane %v653_v51, 2  ;;  %v683_v63 = vmul.f32 1.442695, %v666_v54  ;;  %v580_v2 = vmax.f32 %v578_v44, %v579_v56  ;;  %v465_v11 = vpop.f32.mrb[9].mxu0 }
 0x124   : > { %v707_v1 = vmul.f32 1.442695, %v678_v55  ;;  %v664_v7 = vmax.f32 %v662_v45, %v663_v57  ;;  %v681_v13 = vmul.f32 1.442695, %v665_v58  ;;  %v571_v33 = vmax.f32 %v569_v50, %v570_v60 }
 0x125   : > { %v705_v17 = vmul.f32 1.442695, %v677_v59  ;;  %v655_v22 = vmax.f32 %v653_v51, %v654_v61  ;;  %1590 = vpow2.f32 %v683_v63  ;;  %v668_v34 = vsub.f32 %v2003_v52, %v580_v2 }
 0x126   : > { %v680_v39 = vsub.f32 %v2006_v53, %v664_v7  ;;  %v2047_v40 = vsel %vm525_vm10, -1e+09, %v1467_v20  ;;  %1592 = vpow2.f32 %v707_v1  ;;  %v572_v23 = vrot.slane %v571_v33, 1  ;;  %v2052_v28 = vpop.f32.mrb[10].mxu0 }
 0x127   : > { %v656_v24 = vrot.slane %v655_v22, 1  ;;  %v588_v25 = vsel %vm552_vm3, %v2047_v40, -inf  ;;  %1594 = vpow2.f32 %v681_v13  ;;  %v687_v29 = vmul.f32 1.442695, %v668_v34  ;;  %v2054_v52 = vpop.f32.mrb[11].mxu0 }
 0x128   : > { %v711_v30 = vmul.f32 1.442695, %v680_v39  ;;  %v589_v35 = vrot.slane %v588_v25, 4  ;;  %1596 = vpow2.f32 %v705_v17  ;;  %v573_v53 = vmax.f32 %v571_v33, %v572_v23  ;;  %v515_v33 = vld [vmem:[%s1973_s14 + $0x58] sm:$0xff] }
 0x129   : > { %v657_v49 = vmax.f32 %v655_v22, %v656_v24  ;;  %v2058_v20 = vsel %vm524_vm11, -1e+09, %v445_v26  ;;  %1598 = vpow2.f32 %v687_v29  ;;  %v2064_v38 = vsel %vm527_vm12, -1e+09, %v1470_v41 }
 0x12a   : > { %v590_v36 = vmax.f32 %v588_v25, %v589_v35  ;;  %v581_v37 = vsel %vm552_vm3, %v2058_v20, -inf  ;;  %v667_v42 = vsub.f32 %v2016_v3, %v573_v53  ;;  %vm528_vm15 = vcmp.eq.f32.partialorder %v512_v27, 0.0  ;;  %v514_v53 = vld [vmem:[%s1973_s14 + $0x50] sm:$0xff]  ;;  %s1418_s14 = sshll.u32 %s1818_s25, 8  ;;  %s1759_s25 = smov [#allocation5]  }
 0x12b   : > { %v582_v43 = vrot.slane %v581_v37, 4  ;;  %v602_v45 = vsel %vm552_vm3, %v2064_v38, -inf  ;;  %v2071_v0 = vsel %vm526_vm13, -1e+09, %v455_v46  ;;  %v2075_v26 = vsel %vm529_vm14, -1e+09, %v1473_v62  ;;  %s2292_s11 = scalar_lea.hbm %s2341_s6, %s1418_s14 }
 0x12c   : > { %v591_v44 = vrot.slane %v590_v36, 2  ;;  %v685_v47 = vmul.f32 1.442695, %v667_v42  ;;  %v679_v21 = vsub.f32 %v2019_v4, %v657_v49  ;;  %v603_v48 = vrot.slane %v602_v45, 4  ;;  %s1691_s17 = sshll.u32 %s1759_s25, 4  ;;  %s1692_s17 = int_to_ptr.vmem [resolvable:$false] %s1691_s17 }
 0x12d   : > { %v583_v41 = vmax.f32 %v581_v37, %v582_v43  ;;  %1600 = vpow2.f32 %v711_v30  ;;  %v595_v50 = vsel %vm552_vm3, %v2071_v0, -inf  ;;  %v2080_v51 = vsel %vm528_vm15, -1e+09, %v465_v11  ;;  %s1693_s18 = scalar_lea.vmem %s1692_s17, 512 }
 0x12e   : > { %v592_v3 = vmax.f32 %v590_v36, %v591_v44  ;;  %1602 = vpow2.f32 %v685_v47  ;;  %v604_v46 = vmax.f32 %v602_v45, %v603_v48  ;;  %v616_v32 = vsel %vm552_vm3, %v2075_v26, -inf }
 0x12f   : > { %v584_v31 = vrot.slane %v583_v41, 2  ;;  %v2084_v54 = vpop.eup %1590  ;;  %v709_v57 = vmul.f32 1.442695, %v679_v21  ;;  %v596_v63 = vrot.slane %v595_v50, 4  ;;  %v617_v1 = vrot.slane %v616_v32, 4 }
 0x130   : > { %v593_v55 = vrot.slane %v592_v3, 1  ;;  %v2086_v4 = vpop.eup %1592  ;;  %v720_v56 = vsel %vm552_vm3, %v2084_v54, 0.0  ;;  %v605_v59 = vrot.slane %v604_v46, 2  ;;  %vm531_vm1 = vcmp.eq.f32.partialorder %v515_v33, 0.0 }
 0x131   : > { %v585_v58 = vmax.f32 %v583_v41, %v584_v31  ;;  %v2090_v60 = vpop.eup %1594  ;;  %v804_v61 = vsel %vm552_vm3, %v2086_v4, 0.0  ;;  %v721_v7 = vrot.slane %v720_v56, 4  ;;  %1604 = vpow2.f32 %v709_v57 }
 0x132   : > { %v594_v62 = vmax.f32 %v592_v3, %v593_v55  ;;  %v2094_v2 = vpop.eup %1596  ;;  %v805_v11 = vrot.slane %v804_v61, 4  ;;  %v713_v13 = vsel %vm552_vm3, %v2090_v60, 0.0  ;;  %v606_v24 = vmax.f32 %v604_v46, %v605_v59 }
 0x133   : > { %v586_v17 = vrot.slane %v585_v58, 1  ;;  %v2099_v22 = vpop.eup %1598  ;;  %v714_v34 = vrot.slane %v713_v13, 4  ;;  %v797_v39 = vsel %vm552_vm3, %v2094_v2, 0.0  ;;  %v722_v49 = vadd.f32 %v721_v7, %v720_v56 }
 0x134   : > { %v670_v23 = vsub.f32 %v2047_v40, %v594_v62  ;;  %v806_v25 = vadd.f32 %v805_v11, %v804_v61  ;;  %v798_v27 = vrot.slane %v797_v39, 4  ;;  %v734_v29 = vsel %vm552_vm3, %v2099_v22, 0.0 }
 0x135   : > { %v587_v30 = vmax.f32 %v585_v58, %v586_v17  ;;  %v715_v35 = vadd.f32 %v714_v34, %v713_v13  ;;  %v735_v36 = vrot.slane %v734_v29, 4  ;;  %v607_v40 = vrot.slane %v606_v24, 1 }
 0x136   : > { %v691_v37 = vmul.f32 1.442695, %v670_v23  ;;  %v807_v43 = vrot.slane %v806_v25, 2  ;;  %v597_v45 = vmax.f32 %v595_v50, %v596_v63  ;;  %v799_v21 = vadd.f32 %v798_v27, %v797_v39 }
 0x137   : > { %v2107_v42 = vpop.eup %1600  ;;  %v669_v44 = vsub.f32 %v2058_v20, %v587_v30  ;;  %v618_v41 = vmax.f32 %v616_v32, %v617_v1  ;;  %vm530_vm2 = vcmp.eq.f32.partialorder %v514_v53, 0.0  ;;  %v716_v48 = vrot.slane %v715_v35, 2 }
 0x138   : > { %v2110_v47 = vpop.eup %1602  ;;  %1606 = vpow2.f32 %v691_v37  ;;  %v609_v46 = vsel %vm552_vm3, %v2080_v51, -inf  ;;  %v723_v55 = vrot.slane %v722_v49, 2  ;;  %v2116_v56 = vadd.f32 %v735_v36, %v734_v29 }
 0x139   : > { %v727_v3 = vsel %vm552_vm3, %v2110_v47, 0.0  ;;  %v689_v31 = vmul.f32 1.442695, %v669_v44  ;;  %v2120_v20 = vsel %vm552_vm3, %v2107_v42, 0.0  ;;  %v808_v57 = vadd.f32 %v807_v43, %v806_v25 }
 0x13a   : > { %v728_v50 = vrot.slane %v727_v3, 4  ;;  %v608_v32 = vmax.f32 %v606_v24, %v607_v40  ;;  %v598_v58 = vrot.slane %v597_v45, 2  ;;  %v800_v59 = vrot.slane %v799_v21, 2 }
 0x13b   : > { %1608 = vpow2.f32 %v689_v31  ;;  %v619_v62 = vrot.slane %v618_v41, 2  ;;  %v610_v63 = vrot.slane %v609_v46, 4  ;;  %v2122_v1 = vadd.f32 %v716_v48, %v715_v35  ;;  %v2132_v30 = vpop.eup %1604 }
 0x13c   : > { %v729_v61 = vadd.f32 %v728_v50, %v727_v3  ;;  %v672_v7 = vsub.f32 %v2064_v38, %v608_v32  ;;  %v599_v11 = vmax.f32 %v597_v45, %v598_v58  ;;  %v2127_v13 = vsel %vm531_vm1, -1e+09, %v2052_v28 }
 0x13d   : > { %v620_v34 = vmax.f32 %v618_v41, %v619_v62  ;;  %v611_v39 = vmax.f32 %v609_v46, %v610_v63  ;;  %v630_v23 = vsel %vm552_vm3, %v2127_v13, -inf  ;;  %v737_v24 = vrot.slane %v2116_v56, 2 }
 0x13e   : > { %v730_v17 = vrot.slane %v729_v61, 2  ;;  %v695_v25 = vmul.f32 1.442695, %v672_v7  ;;  %v600_v27 = vrot.slane %v599_v11, 1  ;;  %v631_v29 = vrot.slane %v630_v23, 4 }
 0x13f   : > { %v2134_v35 = vadd.f32 %v800_v59, %v799_v21  ;;  %v621_v38 = vrot.slane %v620_v34, 1  ;;  %v612_v36 = vrot.slane %v611_v39, 2  ;;  %v2138_v28 = vsel %vm530_vm2, -1e+09, %v2054_v52 }
 0x140   : > { %v2140_v33 = vadd.f32 %v730_v17, %v729_v61  ;;  %1610 = vpow2.f32 %v695_v25  ;;  %v601_v37 = vmax.f32 %v599_v11, %v600_v27  ;;  %v632_v43 = vmax.f32 %v630_v23, %v631_v29 }
 0x141   : > { %v622_v40 = vmax.f32 %v620_v34, %v621_v38  ;;  %v613_v45 = vmax.f32 %v611_v39, %v612_v36  ;;  %v623_v41 = vsel %vm552_vm3, %v2138_v28, -inf  ;;  %v724_v21 = vadd.f32 %v723_v55, %v722_v49 }
 0x142   : > { %v2142_v44 = vpop.eup %1606  ;;  %v671_v53 = vsub.f32 %v2071_v0, %v601_v37  ;;  %v633_v52 = vrot.slane %v632_v43, 2  ;;  %v624_v3 = vrot.slane %v623_v41, 4  ;;  %v809_v63 = vrot.slane %v808_v57, 1 }
 0x143   : > { %v748_v48 = vsel %vm552_vm3, %v2142_v44, 0.0  ;;  %v674_v46 = vsub.f32 %v2075_v26, %v622_v40  ;;  %v614_v50 = vrot.slane %v613_v45, 1  ;;  %v725_v32 = vrot.slane %v724_v21, 1 }
 0x144   : > { %v749_v31 = vrot.slane %v748_v48, 4  ;;  %v693_v59 = vmul.f32 1.442695, %v671_v53  ;;  %v634_v61 = vmax.f32 %v632_v43, %v633_v52  ;;  %v625_v62 = vmax.f32 %v623_v41, %v624_v3 }
 0x145   : > { %v2150_v58 = vpop.eup %1608  ;;  %v699_v55 = vmul.f32 1.442695, %v674_v46  ;;  %v615_v11 = vmax.f32 %v613_v45, %v614_v50  ;;  %v726_v23 = vadd.f32 %v725_v32, %v724_v21  ;;  %v810_v38 = vadd.f32 %v809_v63, %v808_v57 }
 0x146   : > { %v750_v7 = vadd.f32 %v749_v31, %v748_v48  ;;  %v741_v49 = vsel %vm552_vm3, %v2150_v58, 0.0  ;;  %1612 = vpow2.f32 %v693_v59  ;;  %v635_v17 = vrot.slane %v634_v61, 1 }
 0x147   : > { %v742_v0 = vrot.slane %v741_v49, 4  ;;  %v626_v34 = vrot.slane %v625_v62, 2  ;;  %1614 = vpow2.f32 %v699_v55  ;;  %v673_v26 = vsub.f32 %v2080_v51, %v615_v11 }
 0x148   : > { %v751_v39 = vrot.slane %v750_v7, 2  ;;  %v636_v27 = vmax.f32 %v634_v61, %v635_v17  ;;  %1616 = vrcp.f32 %v726_v23  ;;  %v738_v43 = vadd.f32 %v737_v24, %v2116_v56 }
 0x149   : > { %v743_v25 = vadd.f32 %v742_v0, %v741_v49  ;;  %v627_v29 = vmax.f32 %v625_v62, %v626_v34  ;;  %v697_v37 = vmul.f32 1.442695, %v673_v26  ;;  %1618 = vrcp.f32 %v810_v38 }
 0x14a   : > { %v752_v36 = vadd.f32 %v751_v39, %v750_v7  ;;  %v2156_v40 = vpop.eup %1610  ;;  %v676_v41 = vsub.f32 %v2127_v13, %v636_v27  ;;  %v739_v21 = vrot.slane %v738_v43, 1  ;;  %v718_v53 = vrot.slane %v2122_v1, 1 }
 0x14b   : > { %v744_v45 = vrot.slane %v743_v25, 2  ;;  %v628_v48 = vrot.slane %v627_v29, 1  ;;  %v762_v51 = vsel %vm552_vm3, %v2156_v40, 0.0  ;;  %1620 = vpow2.f32 %v697_v37 }
 0x14c   : > { %v763_v52 = vrot.slane %v762_v51, 4  ;;  %v703_v3 = vmul.f32 1.442695, %v676_v41  ;;  %v740_v46 = vadd.f32 %v739_v21, %v738_v43  ;;  %v719_v56 = vadd.f32 %v718_v53, %v2122_v1 }
 0x14d   : > { %v745_v57 = vadd.f32 %v744_v45, %v743_v25  ;;  %v629_v31 = vmax.f32 %v627_v29, %v628_v48  ;;  %v732_v24 = vrot.slane %v2140_v33, 1  ;;  %v802_v13 = vrot.slane %v2134_v35, 1 }
 0x14e   : > { %1622 = vpow2.f32 %v703_v3  ;;  %v753_v32 = vrot.slane %v752_v36, 1  ;;  %v819_v59 = vrot.slane %v2120_v20, 4  ;;  %v811_v1 = vsel %vm552_vm3, %v2132_v30, 0.0 }
 0x14f   : > { %v675_v50 = vsub.f32 %v2138_v28, %v629_v31  ;;  %1624 = vrcp.f32 %v740_v46  ;;  %v733_v61 = vadd.f32 %v732_v24, %v2140_v33  ;;  %v803_v62 = vadd.f32 %v802_v13, %v2134_v35 }
 0x150   : > { %v2169_v63 = vpop.eup %1612  ;;  %v764_v7 = vadd.f32 %v763_v52, %v762_v51  ;;  %1626 = vrcp.f32 %v719_v56  ;;  %v754_v11 = vadd.f32 %v753_v32, %v752_v36  ;;  %v746_v0 = vrot.slane %v745_v57, 1 }
 0x151   : > { %v701_v49 = vmul.f32 1.442695, %v675_v50  ;;  %v2173_v55 = vpop.eup %1614  ;;  %v755_v28 = vsel %vm552_vm3, %v2169_v63, 0.0  ;;  %1628 = vrcp.f32 %v733_v61  ;;  %v820_v34 = vadd.f32 %v819_v59, %v2120_v20 }
 0x152   : > { %v756_v17 = vrot.slane %v755_v28, 4  ;;  %v776_v35 = vsel %vm552_vm3, %v2173_v55, 0.0  ;;  %v1617_v33 = vpop.eup %1616  ;;  %v812_v23 = vrot.slane %v811_v1, 4  ;;  %v765_v25 = vrot.slane %v764_v7, 2 }
 0x153   : > { %1630 = vpow2.f32 %v701_v49  ;;  %v777_v39 = vrot.slane %v776_v35, 4  ;;  %v1619_v26 = vpop.eup %1618  ;;  %v828_v29 = vmul.f32 %v1617_v33, %v2084_v54  ;;  %v747_v37 = vadd.f32 %v746_v0, %v745_v57 }
 0x154   : > { %1632 = vrcp.f32 %v803_v62  ;;  %v757_v27 = vadd.f32 %v756_v17, %v755_v28  ;;  %v821_v41 = vrot.slane %v820_v34, 2  ;;  %v813_v21 = vadd.f32 %v812_v23, %v811_v1 }
 0x155   : > { %v2181_v38 = vpop.eup %1620  ;;  %v778_v36 = vadd.f32 %v777_v39, %v776_v35  ;;  %1634 = vrcp.f32 %v754_v11  ;;  %864 = vperm.xlu0 %1588, %v828_v29   ;;  %v766_v53 = vadd.f32 %v765_v25, %v764_v7  ;;  %v852_v54 = vmul.f32 %v1619_v26, %v2086_v4 }
 0x156   : > { %v758_v43 = vrot.slane %v757_v27, 2  ;;  %v769_v45 = vsel %vm552_vm3, %v2181_v38, 0.0  ;;  %1636 = vrcp.f32 %v747_v37  ;;  %v822_v59 = vadd.f32 %v821_v41, %v820_v34 }
 0x157   : > { %v779_v20 = vrot.slane %v778_v36, 2  ;;  %v770_v48 = vrot.slane %v769_v45, 4  ;;  %v814_v4 = vrot.slane %v813_v21, 2  ;;  %vm1089_vm5 = vcmask 1043459  }
 0x158   : > { %v2185_v51 = vpop.eup %1622  ;;  %v759_v52 = vadd.f32 %v758_v43, %v757_v27  ;;  %v823_v43 = vrot.slane %v822_v59, 1  ;;  %vm1091_vm6 = vcmask 1044484   ;;  %vm1093_vm7 = vcmask 1045509  }
 0x159   : > { %v1625_v3 = vpop.eup %1624  ;;  %v780_v31 = vadd.f32 %v779_v20, %v778_v36  ;;  %v771_v46 = vadd.f32 %v770_v48, %v769_v45  ;;  %v790_v57 = vsel %vm552_vm3, %v2185_v51, 0.0  ;;  %924 = vperm.xlu0 %1588, %v852_v54   ;;  %v815_v25 = vadd.f32 %v814_v4, %v813_v21 }
 0x15a   : > { %v1627_v56 = vpop.eup %1626  ;;  %v791_v24 = vrot.slane %v790_v57, 4  ;;  %v832_v13 = vmul.f32 %v1625_v3, %v2099_v22  ;;  %v760_v50 = vrot.slane %v759_v52, 1  ;;  %v767_v22 = vrot.slane %v766_v53, 1 }
 0x15b   : > { %v1629_v32 = vpop.eup %1628  ;;  %v772_v61 = vrot.slane %v771_v46, 2  ;;  %v781_v62 = vrot.slane %v780_v31, 1  ;;  %v826_v49 = vmul.f32 %v1627_v56, %v2090_v60  ;;  %v816_v54 = vrot.slane %v815_v25, 1 }
 0x15c   : > { %v792_v7 = vadd.f32 %v791_v24, %v790_v57  ;;  %874 = vperm.xlu1 %1589, %v832_v13   ;;  %v761_v28 = vadd.f32 %v760_v50, %v759_v52  ;;  %v830_v34 = vmul.f32 %v1629_v32, %v2110_v47  ;;  %v768_v37 = vadd.f32 %v767_v22, %v766_v53 }
 0x15d   : > { %v2191_v1 = vpop.eup %1630  ;;  %v773_v0 = vadd.f32 %v772_v61, %v771_v46  ;;  %v782_v35 = vadd.f32 %v781_v62, %v780_v31  ;;  %859 = vperm.xlu0 %1588, %v826_v49   ;;  %v824_v21 = vadd.f32 %v823_v43, %v822_v59  ;;  %v817_v46 = vadd.f32 %v816_v54, %v815_v25 }
 0x15e   : > { %v1633_v11 = vpop.eup %1632  ;;  %v783_v17 = vsel %vm552_vm3, %v2191_v1, 0.0  ;;  %v793_v33 = vrot.slane %v792_v7, 2  ;;  %1638 = vrcp.f32 %v761_v28  ;;  %v1188_v28 = vld [vmem:[#allocation2 + $0x8] sm:$0xff]  ;;  %vm1085_vm3 = vcmask 1041409  }
 0x15f   : > { %v784_v39 = vrot.slane %v783_v17, 4  ;;  %v1635_v26 = vpop.eup %1634  ;;  %1640 = vrcp.f32 %v782_v35  ;;  %v774_v23 = vrot.slane %v773_v0, 1  ;;  %v850_v29 = vmul.f32 %v1633_v11, %v2094_v2 }
 0x160   : > { %v794_v27 = vadd.f32 %v793_v33, %v792_v7  ;;  %869 = vperm.xlu1 %1589, %v830_v34   ;;  %v836_v41 = vmul.f32 %v1635_v26, %v2142_v44  ;;  %v1637_v48 = vpop.eup %1636  ;;  %vm1095_vm8 = vcmask 1046534   ;;  %vm1097_vm9 = vcmask 1047559  }
 0x161   : > { %v785_v60 = vadd.f32 %v784_v39, %v783_v17  ;;  %v775_v36 = vadd.f32 %v774_v23, %v773_v0  ;;  %919 = vperm.xlu0 %1588, %v850_v29   ;;  %v834_v3 = vmul.f32 %v1637_v48, %v2150_v58 }
 0x162   : > { %v795_v20 = vrot.slane %v794_v27, 1 }
 0x163   : > { %v786_v45 = vrot.slane %v785_v60, 2  ;;  %1642 = vrcp.f32 %v775_v36 }
 0x164   : > { %884 = vperm.xlu1 %1589, %v836_v41   ;;  %v796_v52 = vadd.f32 %v795_v20, %v794_v27  ;;  %1644 = vrcp.f32 %v768_v37 }
 0x165   : > { %v787_v47 = vadd.f32 %v786_v45, %v785_v60 }
 0x166   : > { %1646 = vrcp.f32 %v796_v52 }
 0x167   : > { %v788_v2 = vrot.slane %v787_v47, 1  ;;  %1648 = vrcp.f32 %v824_v21 }
 0x168   : > { %v1639_v31 = vpop.eup %1638  ;;  %879 = vperm.xlu1 %1589, %v834_v3  }
 0x169   : > { %v789_v53 = vadd.f32 %v788_v2, %v787_v47  ;;  %v1641_v57 = vpop.eup %1640  ;;  %v838_v56 = vmul.f32 %v1639_v31, %v2169_v63 }
 0x16a   : > { %v844_v44 = vmul.f32 %v1641_v57, %v2173_v55 }
 0x16b   : > { %1650 = vrcp.f32 %v789_v53 }
 0x16c   : > { %904 = vperm.xlu0 %1588, %v844_v44   ;;  %889 = vperm.xlu1 %1589, %v838_v56   ;;  %1652 = vrcp.f32 %v817_v46 }
 0x16d   : > { %v1643_v24 = vpop.eup %1642 }
 0x16e   : > { %v842_v13 = vmul.f32 %v1643_v24, %v2181_v38  ;;  %v1645_v58 = vpop.eup %1644 }
 0x16f   : > { %v840_v59 = vmul.f32 %v1645_v58, %v2156_v40  ;;  %v1066_v40 = vld [vmem:[%s2338_s3 + $0x8] sm:$0xff] }
 0x170   : > { %v1647_v50 = vpop.eup %1646  ;;  %899 = vperm.xlu1 %1589, %v842_v13  }
 0x171   : > { %v848_v32 = vmul.f32 %v1647_v50, %v2185_v51  ;;  %v1649_v61 = vpop.eup %1648  ;;  %v1065_v51 = vld [vmem:[%s2338_s3] sm:$0xff] }
 0x172   : > { %v856_v4 = vmul.f32 %v1649_v61, %v2107_v42  ;;  %v1513_v7 = vpack.c.bf16 %v1066_v40, %v1065_v51  ;;  %v1068_v42 = vld [vmem:[%s2338_s3 + $0x18] sm:$0xff] }
 0x173   : > { %914 = vperm.xlu0 %1588, %v848_v32  }
 0x174   : > { %894 = vperm.xlu1 %1589, %v840_v59   ;;  %1514 = vmatprep.subr.bf16.mxu1 %v1513_v7 }
 0x175   : > { %v1651_v62 = vpop.eup %1650  ;;  %1516 = vmatpush3.bf16.msra.mxu1 %v1513_v7 }
 0x176   : > { %v846_v63 = vmul.f32 %v1651_v62, %v2191_v1  ;;  %v1653_v55 = vpop.eup %1652  ;;  %v1067_v1 = vld [vmem:[%s2338_s3 + $0x10] sm:$0xff] }
 0x177   : > { %v854_v38 = vmul.f32 %v1653_v55, %v2132_v30  ;;  %v1517_v49 = vpack.c.bf16 %v1068_v42, %v1067_v1  ;;  %v1187_v30 = vld [vmem:[#allocation2] sm:$0xff] }
 0x178   : > { %909 = vperm.xlu0 %1588, %v846_v63   ;;  %934 = vperm.xlu1 %1589, %v856_v4   ;;  %v2220_v11 = vpack.c.bf16 %v1188_v28, %v1187_v30 }
 0x179   : > { %1518 = vmatprep.subr.bf16.mxu1 %v1517_v49 }
 0x17a   : > { %1520 = vmatpush3.bf16.msra.mxu1 %v1517_v49 }
 0x17b   : > { %1522 = vmatprep.subr.bf16.mxu1 %v2220_v11 }
 0x17c   : > { %929 = vperm.xlu0 %1588, %v854_v38  }
 0x1d4   : > { %v865_v0 = vpop.permute.xlu0 %864 }
 0x1d5   : > { %v938_v17 = vmul.f32 %v865_v0, %v1914_v8 }
 0x1d7   : > { %v960_v22 = vsel %vm310_vm0, %v938_v17, 0.0 }
 0x1d8   : > { %v925_v35 = vpop.permute.xlu0 %924  ;;  %v961_v34 = vrot.slane %v960_v22, 4 }
 0x1d9   : > { %v950_v23 = vmul.f32 %v925_v35, %v1917_v9 }
 0x1da   : > { %v962_v8 = vadd.f32 %v961_v34, %v960_v22 }
 0x1db   : > { %v875_v33 = vpop.permute.xlu1 %874  ;;  %v1044_v41 = vsel %vm310_vm0, %v950_v23, 0.0 }
 0x1dc   : > { %v940_v39 = vmul.f32 %v875_v33, %v1931_v12  ;;  %v860_v26 = vpop.permute.xlu0 %859  ;;  %v963_v52 = vrot.slane %v962_v8, 2  ;;  %v1045_v54 = vrot.slane %v1044_v41, 4 }
 0x1dd   : > { %v937_v27 = vmul.f32 %v860_v26, %v1904_v5 }
 0x1de   : > { %v974_v25 = vsel %vm310_vm0, %v940_v39, 0.0  ;;  %v964_v56 = vadd.f32 %v963_v52, %v962_v8  ;;  %v1654_v8 = vld [vmem:[%s1889_s9 + $0x58] sm:$0xff] }
 0x1df   : > { %v870_v60 = vpop.permute.xlu1 %869  ;;  %v953_v29 = vsel %vm310_vm0, %v937_v27, 0.0  ;;  %v975_v37 = vrot.slane %v974_v25, 4 }
 0x1e0   : > { %v939_v36 = vmul.f32 %v870_v60, %v1920_v10  ;;  %v954_v43 = vrot.slane %v953_v29, 4  ;;  %v920_v45 = vpop.permute.xlu0 %919  ;;  %v965_v4 = vrot.slane %v964_v56, 1 }
 0x1e1   : > { %v949_v9 = vmul.f32 %v920_v45, %v1907_v6  ;;  %v976_v21 = vadd.f32 %v975_v37, %v974_v25  ;;  %v1046_v6 = vadd.f32 %v1045_v54, %v1044_v41 }
 0x1e2   : > { %v967_v12 = vsel %vm310_vm0, %v939_v36, 0.0  ;;  %v955_v20 = vadd.f32 %v954_v43, %v953_v29  ;;  %v966_v34 = vadd.f32 %v965_v4, %v964_v56 }
 0x1e3   : > { %v885_v48 = vpop.permute.xlu1 %884  ;;  %v968_v47 = vrot.slane %v967_v12, 4  ;;  %v1037_v2 = vsel %vm310_vm0, %v949_v9, 0.0  ;;  %v977_v24 = vrot.slane %v976_v21, 2  ;;  %v1047_v38 = vrot.slane %v1046_v6, 2 }
 0x1e4   : > { %v942_v5 = vmul.f32 %v885_v48, %v1943_v15  ;;  %v956_v3 = vrot.slane %v955_v20, 2  ;;  %v1038_v13 = vrot.slane %v1037_v2, 4 }
 0x1e5   : > { %v969_v10 = vadd.f32 %v968_v47, %v967_v12  ;;  %v978_v51 = vadd.f32 %v977_v24, %v976_v21  ;;  %v2244_v26 = vadd.f32 %v1047_v38, %v1046_v6  ;;  %v1655_v12 = vld [vmem:[%s1889_s9 + $0x38] sm:$0xff] }
 0x1e6   : > { %v988_v31 = vsel %vm310_vm0, %v942_v5, 0.0  ;;  %v957_v46 = vadd.f32 %v956_v3, %v955_v20  ;;  %v1039_v40 = vadd.f32 %v1038_v13, %v1037_v2  ;;  %v1657_v13 = vld [vmem:[%s1889_s9 + $0x78] sm:$0xff] }
 0x1e7   : > { %v880_v53 = vpop.permute.xlu1 %879  ;;  %v970_v57 = vrot.slane %v969_v10, 2  ;;  %v989_v58 = vrot.slane %v988_v31, 4 }
 0x1e8   : > { %v941_v44 = vmul.f32 %v880_v53, %v1935_v14  ;;  %v958_v62 = vrot.slane %v957_v46, 1  ;;  %v1040_v23 = vrot.slane %v1039_v40, 2  ;;  %v1656_v53 = vld [vmem:[%s1889_s9 + $0x50] sm:$0xff] }
 0x1e9   : > { %v971_v50 = vadd.f32 %v970_v57, %v969_v10  ;;  %v990_v7 = vadd.f32 %v989_v58, %v988_v31 }
 0x1ea   : > { %v981_v15 = vsel %vm310_vm0, %v941_v44, 0.0  ;;  %v959_v35 = vadd.f32 %v958_v62, %v957_v46  ;;  %v2251_v52 = vadd.f32 %v1040_v23, %v1039_v40 }
 0x1eb   : > { %v982_v32 = vrot.slane %v981_v15, 4  ;;  %v905_v59 = vpop.permute.xlu0 %904  ;;  %v890_v61 = vpop.permute.xlu1 %889  ;;  %v972_v49 = vrot.slane %v971_v50, 1  ;;  %v991_v29 = vrot.slane %v990_v7, 2 }
 0x1ec   : > { %v946_v63 = vmul.f32 %v905_v59, %v1960_v19  ;;  %v943_v55 = vmul.f32 %v890_v61, %v1946_v16  ;;  %v979_v19 = vrot.slane %v978_v51, 1 }
 0x1ed   : > { %v983_v14 = vadd.f32 %v982_v32, %v981_v15  ;;  %v973_v60 = vadd.f32 %v972_v49, %v971_v50  ;;  %v992_v31 = vadd.f32 %v991_v29, %v990_v7 }
 0x1ee   : > { %v1016_v1 = vsel %vm310_vm0, %v946_v63, 0.0  ;;  %v995_v42 = vsel %vm310_vm0, %v943_v55, 0.0  ;;  %v980_v9 = vadd.f32 %v979_v19, %v978_v51 }
 0x1ef   : > { %v984_v30 = vrot.slane %v983_v14, 2  ;;  %v1017_v28 = vrot.slane %v1016_v1, 4  ;;  %v996_v0 = vrot.slane %v995_v42, 4  ;;  %v900_v17 = vpop.permute.xlu1 %899  ;;  %v993_v38 = vrot.slane %v992_v31, 1 }
 0x1f0   : > { %v945_v16 = vmul.f32 %v900_v17, %v1954_v18  ;;  %v1086_v18 = vsel %vm1085_vm3, %v966_v34, %v959_v35 }
 0x1f1   : > { %v985_v22 = vadd.f32 %v984_v30, %v983_v14  ;;  %v1018_v33 = vadd.f32 %v1017_v28, %v1016_v1  ;;  %v997_v39 = vadd.f32 %v996_v0, %v995_v42  ;;  %v1088_v2 = vsel %vm1087_vm4, %v973_v60, %v1086_v18  ;;  %v1658_v14 = vld [vmem:[%s1889_s9 + $0x70] sm:$0xff]  ;;  %s274_s9 = sand.u32 1, %s1745_s22  }
 0x1f2   : > { %v915_v25 = vpop.permute.xlu0 %914  ;;  %v1009_v27 = vsel %vm310_vm0, %v945_v16, 0.0  ;;  %v1090_v30 = vsel %vm1089_vm5, %v980_v9, %v1088_v2  ;;  %v1042_v18 = vrot.slane %v2251_v52, 1  ;;  %s1387_s20 = sshll.u32 %s274_s9, 4  ;;  %s2294_s15 = scalar_lea.sflag [#allocation4], %s274_s9 }
 0x1f3   : > { %v998_v36 = vrot.slane %v997_v39, 2  ;;  %v948_v37 = vmul.f32 %v1654_v8, %v915_v25  ;;  %v895_v43 = vpop.permute.xlu1 %894  ;;  %v1019_v45 = vrot.slane %v1018_v33, 2  ;;  %v1010_v41 = vrot.slane %v1009_v27, 4  ;;  %s276_s29 = scalar_lea.vmem [#allocation5], %s1387_s20 }
 0x1f4   : > { %v944_v20 = vmul.f32 %v1655_v12, %v895_v43  ;;  %v986_v48 = vrot.slane %v985_v22, 1  ;;  %s1295_s10 = sshll.u32 %s276_s29, 4  ;;  %s2287_s10 = int_to_ptr.vmem [resolvable:$true] %s1295_s10 }
 0x1f5   : > { %v999_v47 = vadd.f32 %v998_v36, %v997_v39  ;;  %v1030_v5 = vsel %vm310_vm0, %v948_v37, 0.0  ;;  %v1011_v21 = vadd.f32 %v1010_v41, %v1009_v27  ;;  %v1020_v56 = vadd.f32 %v1019_v45, %v1018_v33  ;;  %s1687_s16 = scalar_lea.vmem %s2287_s10, 256  ;;  %p1694_p2 = scmp.lt.s32.totalorder %s2287_s10, %s1692_s17 }
 0x1f6   : > { %v1031_v54 = vrot.slane %v1030_v5, 4  ;;  %v1002_v10 = vsel %vm310_vm0, %v944_v20, 0.0  ;;  %v987_v15 = vadd.f32 %v986_v48, %v985_v22  ;;  %v994_v39 = vadd.f32 %v993_v38, %v992_v31  ;;  %p1688_p6 = scmp.ne.s32.totalorder %s2287_s10, %s1687_s16  ;;  %p1695_p3 = scmp.lt.s32.totalorder %s1693_s18, %s1687_s16 }
 0x1f7   : > { %v910_v3 = vpop.permute.xlu0 %909  ;;  %v1003_v57 = vrot.slane %v1002_v10, 4  ;;  %v935_v44 = vpop.permute.xlu1 %934  ;;  %v1012_v24 = vrot.slane %v1011_v21, 2  ;;  %v1000_v50 = vrot.slane %v999_v47, 1  ;;  %v1021_v1 = vrot.slane %v1020_v56, 1 }
 0x1f8   : > { %v947_v46 = vmul.f32 %v1656_v53, %v910_v3  ;;  %v1032_v6 = vadd.f32 %v1031_v54, %v1030_v5  ;;  %v952_v58 = vmul.f32 %v1657_v13, %v935_v44  ;;  %v1092_v33 = vsel %vm1091_vm6, %v987_v15, %v1090_v30  ;;  %p1689_p10 = pnand %p1688_p6, %p2352_p9  ;;  %p1696_p4 = por %p1695_p3, %p1694_p2 }
 0x1f9   : > { %v1004_v59 = vadd.f32 %v1003_v57, %v1002_v10  ;;  %v1013_v62 = vadd.f32 %v1012_v24, %v1011_v21  ;;  %v1001_v16 = vadd.f32 %v1000_v50, %v999_v47  ;;  %v1022_v27 = vadd.f32 %v1021_v1, %v1020_v56 }
 0x1fa   : > { %v1023_v32 = vsel %vm310_vm0, %v947_v46, 0.0  ;;  %v1033_v61 = vrot.slane %v1032_v6, 2  ;;  %v1058_v4 = vsel %vm310_vm0, %v952_v58, 0.0  ;;  %v1094_v43 = vsel %vm1093_vm7, %v994_v39, %v1092_v33  ;;  %p1690_p12 = pneg %p1689_p10 }
 0x1fb   : > { %v1024_v63 = vrot.slane %v1023_v32, 4  ;;  %v930_v55 = vpop.permute.xlu0 %929  ;;  %v1005_v51 = vrot.slane %v1004_v59, 2  ;;  %v1059_v7 = vrot.slane %v1058_v4, 4  ;;  %v1014_v42 = vrot.slane %v1013_v62, 1 }
 0x1fc   : > { %v951_v40 = vmul.f32 %v1658_v14, %v930_v55  ;;  %v1034_v28 = vadd.f32 %v1033_v61, %v1032_v6  ;;  %v1096_v12 = vsel %vm1095_vm8, %v1001_v16, %v1094_v43  ;;  %v1049_v20 = vrot.slane %v2244_v26, 1  ;;  %p1697_p7 = pnand %p1696_p4, %p1690_p12 }
 0x1fd   : > { %v1025_v49 = vadd.f32 %v1024_v63, %v1023_v32  ;;  %v1006_v0 = vadd.f32 %v1005_v51, %v1004_v59  ;;  %v1060_v35 = vadd.f32 %v1059_v7, %v1058_v4  ;;  %v1015_v34 = vadd.f32 %v1014_v42, %v1013_v62 }
 0x1fe   : > { %v1051_v17 = vsel %vm310_vm0, %v951_v40, 0.0  ;;  %v1035_v36 = vrot.slane %v1034_v28, 1  ;;  %v1043_v3 = vadd.f32 %v1042_v18, %v2251_v52  ;;  %v1050_v31 = vadd.f32 %v1049_v20, %v2244_v26  ;;  %v1189_v52 = vld [vmem:[#allocation2 + $0x10] sm:$0xff]  ;;  %v1190_v26 = vld [vmem:[#allocation2 + $0x18] sm:$0xff] }
 0x1ff   : > { %v1026_v19 = vrot.slane %v1025_v49, 2  ;;  %v1052_v22 = vrot.slane %v1051_v17, 4  ;;  %v1007_v23 = vrot.slane %v1006_v0, 1  ;;  %v1061_v25 = vrot.slane %v1060_v35, 2 }
 0x200   : > { %v1099_v9 = vsel %vm1085_vm3, %v1022_v27, %v1015_v34  ;;  %v1036_v21 = vadd.f32 %v1035_v36, %v1034_v28  ;;  %v1525_v13 = vpack.c.bf16 %v1190_v26, %v1189_v52 }
 0x201   : > { %v1027_v60 = vadd.f32 %v1026_v19, %v1025_v49  ;;  %v1053_v29 = vadd.f32 %v1052_v22, %v1051_v17  ;;  %v1008_v8 = vadd.f32 %v1007_v23, %v1006_v0  ;;  %v1062_v37 = vadd.f32 %v1061_v25, %v1060_v35 }
 0x203   : > { %v1028_v45 = vrot.slane %v1027_v60, 1  ;;  %v1054_v41 = vrot.slane %v1053_v29, 2  ;;  %v1063_v48 = vrot.slane %v1062_v37, 1  ;;  %v1098_v47 = vsel %vm1097_vm9, %v1008_v8, %v1096_v12 }
 0x204   : > { %1491 = vmatprep.mubr.msk.f32.mxu1 %vm310_vm0, %v1098_v47 }
 0x205   : > { %v1029_v5 = vadd.f32 %v1028_v45, %v1027_v60  ;;  %v1055_v54 = vadd.f32 %v1054_v41, %v1053_v29  ;;  %v1064_v46 = vadd.f32 %v1063_v48, %v1062_v37 }
 0x207   : > { %v1100_v10 = vsel %vm1087_vm4, %v1029_v5, %v1099_v9  ;;  %v1056_v2 = vrot.slane %v1055_v54, 1 }
 0x208   : > { %v1101_v53 = vsel %vm1089_vm5, %v1036_v21, %v1100_v10 }
 0x209   : > { %v1057_v57 = vadd.f32 %v1056_v2, %v1055_v54  ;;  %v1102_v44 = vsel %vm1091_vm6, %v1043_v3, %v1101_v53 }
 0x20a   : > { %v1103_v56 = vsel %vm1093_vm7, %v1050_v31, %v1102_v44 }
 0x20b   : > { %v1104_v6 = vsel %vm1095_vm8, %v1057_v57, %v1103_v56 }
 0x20c   : > { %v1105_v24 = vsel %vm1097_vm9, %v1064_v46, %v1104_v6 }
 0x20d   : > { %1492 = vmatmul.mubr.msk.f32.vlgmr.msra.gmra.mrb[4].mxu1 %vm310_vm0, %v1105_v24 }
 0x20e   : > { %1524 = vmatpush3.bf16.msra.mxu1 %v2220_v11  ;;  %v1410_v11 = vld [vmem:[%s2340_s5] ss:$0 sm:$0xff] }
 0x20f   : > { %1526 = vmatprep.subr.bf16.mxu1 %v1525_v13 }
 0x212   : > { %1528 = vmatpush3.bf16.msra.mxu1 %v1525_v13 }
 0x2e0   : > { %v1493_v58 = vpop.f32.mrb[4].mxu1 }
 0x2e1   : > { %v1176_v15 = vpop.f32.mrb[5].mxu1  ;;  %v1186_v32 = vmax.f32 %v1493_v58, 0.0 }
 0x2e2   : > { %v1185_v50 = vmax.f32 %v1176_v15, 0.0 }
 0x2e4   : > { %1502 = vmatprep.mubr.msk.f32.mxu1 %vm310_vm0, %v1185_v50 }
 0x2e5   : > { %1503 = vmatmul.mubr.msk.f32.vlgmr.msra.gmra.mrb[6].mxu1 %vm310_vm0, %v1186_v32 }
 0x3b8   : > { %v1504_v59 = vpop.f32.mrb[6].mxu1 }
 0x3b9   : > { %v1276_v61 = vadd.f32 %v1504_v59, %v1410_v11  ;;  %v1270_v62 = vpop.f32.mrb[7].mxu1 }
 0x3ba   : > { %v1271_v63 = vadd.f32 %v1410_v11, %v1270_v62 }
 0x3bb   : > { %1280 = vst [vmem:[%s276_s29 + $0x8] sm:$0xff] %v1276_v61 }
 0x3bc   : > { %1279 = vst [vmem:[%s276_s29] sm:$0xff] %v1271_v63 }
 0x3bd   : > { %1700 = shalt.err (!%p1697_p7)
}
 0x3be   : > { %s1701_s19 = scalar_lea.hbm %s2292_s11, 256  ;;  %s1705_s26 = scalar_lea.hbm %s2341_s6, 512 }
 0x3bf   : > { %p1702_p8 = scmp.ne.s32.totalorder %s2292_s11, %s1701_s19  ;;  %p1706_p1 = scmp.lt.u32.totalorder %s2292_s11, %s2341_s6 }
 0x3c0   : > { %p1707_p0 = scmp.lt.u32.totalorder %s1705_s26, %s1701_s19  ;;  %p1709_p6 = scmp.lt.u32.totalorder %s1701_s19, %s2292_s11 }
 0x3c1   : > { %p1703_p11 = pnand %p1702_p8, %p2352_p9 }
 0x3c2   : > { %p1708_p5 = por %p1707_p0, %p1706_p1 }
 0x3c3   : > { %p1704_p13 = pneg %p1703_p11 }
 0x3c4   : > { %p1710_p10 = por %p1709_p6, %p1708_p5 }
 0x3c6   : > { %p1711_p12 = pnand %p1710_p10, %p1704_p13 }
 0x3c8   : > { %1714 = shalt.err (!%p1711_p12)
}
 0x3c9   : > { %s1760_s14 = smov 128   ;;  %s1761_s13 = smov 8  }
 0x3ca   : > { %1537 = dma.vmem_to_hbm [thread:$0]  (%p2352_p9), %s2287_s10, 256, %s2292_s11, %s2294_s15, %s1760_s14, %s1760_s14, %s1761_s13  }
 0x3cb PF: > { %p1549_p2 = scmp.ge.s32.totalorder %s1753_s24, 2  ;;  %s1310_s12 = sand.u32 1, %s1741_s21  }
 0x3cc   : > { %p2353_p3 = scmp.ne.s32.totalorder %s2346_s8, 0  ;;  %s1311_s16 = scalar_lea.sflag [#allocation4], %s1310_s12 }
 0x3ce   : > { %p1544_p4 = pnand %p1549_p2, %p2353_p3 }
 0x3d0   : > { %1736 = dma.done.wait (!%p1544_p4), %s1311_s16, 256  }
 0x3d1   : > { %1738 = vsyncadd (!%p1544_p4), %s1311_s16, 4294967040  ;;  %p17_p7 = scmp.ge.s32.totalorder %s1822_s27, 4   ;;  %s2354_s21 = smov %s1745_s22 }
 0x3d2   : > { %s2355_s22 = smov %s1749_s23  ;;  %s2356_s23 = smov %s1833_s30 }
 0x3d3   : > { %s2357_s24 = smov %s1822_s27  ;;  %19 = sbr.rel (!%p17_p7) target bundleno = 4 (0x4), region = 87 }
 0x3da   :  { %1316 = vsyncpa [#allocation3], 1 }
 0x3db   :  { %1318 = vsyncpa [#allocation3 + $0x1], 1 }
 0x3dc   :  { %1319 = vsyncpa [#allocation4], 1 }
 0x3dd   :  { %1321 = vsyncpa [#allocation4 + $0x1], 1 }

</bundles_post_ra>
